<compile_context>
chip_gen: v7x
topology: tpu7x:2x2x1
jax: 0.10.0
libtpu: 0.0.40
codegen_flags: <defaults>
</compile_context>

<pallas_src>
import functools

import jax
import jax.numpy as jnp
from jax.experimental import pallas as pl
from jax.experimental.pallas import tpu as pltpu

LANE = 128


# ------------------------------ helpers -------------------------------------

def _round_up(x, m):
    return (x + m - 1) // m * m


def _pad2d(x, rows, cols):
    r, c = x.shape
    return jnp.pad(x, ((0, rows - r), (0, cols - c)))


def _group_pad_rows(x, n_groups, group_size, group_pad):
    """[n_groups*group_size, C] -> [n_groups*group_pad, C], zero rows per group."""
    c = x.shape[1]
    x = x.reshape(n_groups, group_size, c)
    x = jnp.pad(x, ((0, 0), (0, group_pad - group_size), (0, 0)))
    return x.reshape(n_groups * group_pad, c)


def _regroup_leading(x, n_groups, group_size, group_pad):
    """Group-pad the first n_groups*group_size rows; keep remaining rows after."""
    n_head = n_groups * group_size
    head = _group_pad_rows(x[:n_head], n_groups, group_size, group_pad)
    return jnp.concatenate([head, x[n_head:]], axis=0)


# ------------------------------ fused kernel --------------------------------

def _sage_fused_kernel(a0_ref, h0_ref, a1_ref, m0_ref, m1_ref,
                       w0_ref, b0_ref, w1_ref, b1_ref,
                       pw1_ref, pb1_ref, pw2_ref, pb2_ref, pw3_ref, pb3_ref,
                       out_ref, *, num_dst0, num_dst1, e_pad, neg_ratio,
                       compute_dtype):
    """2 SAGEConv('mean') layers + fused link predictor, all VMEM-resident."""
    f32 = jnp.float32
    cd = compute_dtype

    def sage_layer(a, h_src, w_stack, b, num_dst, mask, relu):
        # mean aggregation; agg-first keeps the smaller [num_dst, d]
        # intermediate resident (vs. projecting all num_src rows first).
        agg = jnp.dot(a, h_src, preferred_element_type=f32).astype(cd)
        # fused self+neighbour projection: one MXU pass with K = 2*d_in
        # (fills the 256-deep MXU on v6e/v7x instead of two K=128 passes).
        cat = jnp.concatenate([h_src[:num_dst], agg], axis=1)
        out = jnp.dot(cat, w_stack, preferred_element_type=f32) + b   # f32 epilogue
        if relu:
            out = jnp.maximum(out, 0.0)
        return out * mask           # zero padded/ghost dst rows (no bias junk)

    h0 = sage_layer(a0_ref[...], h0_ref[...], w0_ref[...], b0_ref[...],
                    num_dst0, m0_ref[...], relu=True)
    h1 = sage_layer(a1_ref[...], h0.astype(cd), w1_ref[...], b1_ref[...],
                    num_dst1, m1_ref[...], relu=False)

    # ---- link predictor: pos + all neg samples in ONE broadcast multiply ----
    d = h1.shape[1]
    src = h1[:e_pad]                                       # f32, tile-aligned slice
    dst = h1[e_pad:].reshape(1 + neg_ratio, e_pad, d)      # [pos, neg_0, ...]
    x = jnp.broadcast_to(src[None], (1 + neg_ratio, e_pad, d)) * dst
    x = x.reshape((1 + neg_ratio) * e_pad, d).astype(cd)

    h = jnp.maximum(jnp.dot(x, pw1_ref[...], preferred_element_type=f32)
                    + pb1_ref[...], 0.0)
    h = jnp.maximum(jnp.dot(h.astype(cd), pw2_ref[...], preferred_element_type=f32)
                    + pb2_ref[...], 0.0)
    # final Linear(dim_out -> 1): VPU multiply + lane reduction (no 1-wide MXU).
    score = jnp.sum(h * pw3_ref[...], axis=-1, keepdims=True) + pb3_ref[...]
    # lane-dense store; wrapper slices column 0.
    # TODO(synk): lane-packed score layout at production edge counts.
    out_ref[...] = jnp.broadcast_to(score, out_ref.shape).astype(out_ref.dtype)


# ------------------------------ parameter prep (one-time) -------------------

def prepare_sage_params(layer_params, pred_params, compute_dtype=jnp.bfloat16):
    """Pad weights to 128 lanes, stack [W_self; W_neigh], cast MXU operands to
    compute_dtype (biases stay f32).  Called ONCE, outside the per-step path."""
    (wn0, ws0, b0), (wn1, ws1, b1) = layer_params
    pw1, pb1, pw2, pb2, pw3, pb3 = pred_params
    cd = compute_dtype
    f32 = jnp.float32
    dn, dh = wn0.shape
    do = wn1.shape[1]
    dn_p, dh_p, do_p = (_round_up(d, LANE) for d in (dn, dh, do))

    w0 = jnp.concatenate([_pad2d(ws0, dn_p, dh_p),
                          _pad2d(wn0, dn_p, dh_p)], axis=0).astype(cd)
    w1 = jnp.concatenate([_pad2d(ws1, dh_p, do_p),
                          _pad2d(wn1, dh_p, do_p)], axis=0).astype(cd)
    return (w0, _pad2d(b0.reshape(1, -1), 1, dh_p).astype(f32),
            w1, _pad2d(b1.reshape(1, -1), 1, do_p).astype(f32),
            _pad2d(pw1, do_p, do_p).astype(cd),
            _pad2d(pb1.reshape(1, -1), 1, do_p).astype(f32),
            _pad2d(pw2, do_p, do_p).astype(cd),
            _pad2d(pb2.reshape(1, -1), 1, do_p).astype(f32),
            _pad2d(pw3.reshape(-1, 1).T, 1, do_p).astype(f32),
            pb3.reshape(1, 1).astype(f32))


# ------------------------------ wrapper --------------------------------------

def sage_forward(h_src0, a0, a1, prepped_params, *, neg_sample_ratio=1):
    """Fused SAGE forward.  Returns (h_pos, h_neg) like the torch module."""
    (w0, b0, w1, b1, pw1, pb1, pw2, pb2, pw3, pb3) = prepped_params
    cd = w0.dtype
    # packed-sublane multiple: 8 (f32), 16 (bf16), 32 (int8)
    SUB = max(8, 32 // jnp.dtype(cd).itemsize)

    dn_p = w0.shape[0] // 2
    dh_p = w0.shape[1]
    do_p = w1.shape[1]

    num_dst0, num_src0 = a0.shape
    num_dst1, num_src1 = a1.shape
    assert num_src1 == num_dst0, "layer-1 src nodes must be layer-0 dst nodes"
    assert num_dst0 >= num_dst1
    assert h_src0.shape[0] == num_src0
    ng = neg_sample_ratio + 2
    assert num_dst1 % ng == 0, "num_dst1 must be divisible by neg_sample_ratio+2"
    ne = num_dst1 // ng

    e_pad = _round_up(ne, SUB)                 # predictor row-block size
    dst1_p = ng * e_pad
    dst0_g = dst1_p + (num_dst0 - num_dst1)
    src0_g = dst1_p + (num_src0 - num_dst1)
    dst0_p = _round_up(dst0_g, SUB)
    src0_p = _round_up(src0_g, SUB)
    n_pred = (1 + neg_sample_ratio) * e_pad

    # --- per-call prep: regroup the (src|pos|neg) dst blocks onto e_pad row
    #     boundaries (rows AND the matching columns), then zero-pad. ----------
    h0_in = _pad2d(_regroup_leading(h_src0, ng, ne, e_pad), src0_p, dn_p).astype(cd)
    a0_re = _regroup_leading(a0, ng, ne, e_pad)               # layer-0 dst rows
    a0_re = _regroup_leading(a0_re.T, ng, ne, e_pad).T        # layer-0 src cols
    a0_p = _pad2d(a0_re, dst0_p, src0_p).astype(cd)
    a1_re = _regroup_leading(a1, ng, ne, e_pad)               # layer-1 dst rows
    a1_re = _regroup_leading(a1_re.T, ng, ne, e_pad).T        # layer-1 src cols
    a1_p = _pad2d(a1_re, dst1_p, dst0_p).astype(cd)

    # validity masks (1 = real dst row); padded rows never see bias/ReLU junk.
    r0 = jnp.arange(dst0_p)
    m0 = jnp.where(r0 < dst1_p, (r0 % e_pad) < ne, r0 < dst0_g)
    m0 = m0.astype(jnp.float32).reshape(dst0_p, 1)
    r1 = jnp.arange(dst1_p)
    m1 = ((r1 % e_pad) < ne).astype(jnp.float32).reshape(dst1_p, 1)

    inputs = (a0_p, h0_in, a1_p, m0, m1, w0, b0, w1, b1,
              pw1, pb1, pw2, pb2, pw3, pb3)

    # --- VMEM budget (whole-MFG-in-VMEM path); fail loudly if it can't fit. --
    in_bytes = sum(x.size * x.dtype.itemsize for x in inputs)
    out_bytes = n_pred * LANE * 4
    cdi = jnp.dtype(cd).itemsize
    interm_bytes = (4 * (dst0_p * dh_p + dst1_p * do_p + 3 * n_pred * do_p)
                    + cdi * (dst0_p * 3 * dn_p + dst1_p * 3 * dh_p
                             + 2 * n_pred * do_p))
    needed = 2 * (in_bytes + out_bytes + interm_bytes)
    try:
        vmem_cap = int(pltpu.get_tpu_info().vmem_capacity_bytes)
    except Exception:
        vmem_cap = 64 << 20        # v7x per-TensorCore VMEM (tightest generation)
    if needed > int(0.9 * vmem_cap):
        # TODO(synk): switch to the tiled grid path for MFGs this large.
        raise ValueError("MFG too large for the fused whole-in-VMEM SAGE path")
    vmem_limit = min(int(0.9 * vmem_cap), max(32 << 20, needed))

    kernel = functools.partial(
        _sage_fused_kernel,
        num_dst0=dst0_p, num_dst1=dst1_p, e_pad=e_pad,
        neg_ratio=neg_sample_ratio, compute_dtype=cd)

    flops = int(2 * dst0_p * src0_p * dn_p + 2 * dst0_p * (2 * dn_p) * dh_p
                + 2 * dst1_p * dst0_p * dh_p + 2 * dst1_p * (2 * dh_p) * do_p
                + 2 * (2 * n_pred * do_p * do_p) + 2 * n_pred * do_p)

    vmem_spec = pl.BlockSpec(memory_space=pltpu.MemorySpace.VMEM)
    out = pl.pallas_call(
        kernel,
        out_shape=jax.ShapeDtypeStruct((n_pred, LANE), jnp.float32),
        in_specs=[vmem_spec] * len(inputs),
        out_specs=vmem_spec,
        compiler_params=pltpu.CompilerParams(vmem_limit_bytes=vmem_limit),
        cost_estimate=pl.CostEstimate(flops=flops, transcendentals=0,
                                      bytes_accessed=int(in_bytes + out_bytes)),
    )(*inputs)

    scores = out[:, :1].reshape(1 + neg_sample_ratio, e_pad, 1)
    h_pos = scores[0, :ne]
    h_neg = scores[1:, :ne].reshape(neg_sample_ratio * ne, 1)
    return h_pos, h_neg


# ------------------------------ pure-JAX reference ---------------------------

def _reference_forward(h_src0, a0, a1, layer_params, pred_params, neg_ratio):
    (wn0, ws0, b0), (wn1, ws1, b1) = layer_params
    pw1, pb1, pw2, pb2, pw3, pb3 = pred_params

    def layer(a, h_src, wn, ws, b, relu):
        nd = a.shape[0]
        out = h_src[:nd] @ ws + (a @ h_src) @ wn + b
        return jnp.maximum(out, 0.0) if relu else out

    h = layer(a0, h_src0, wn0, ws0, b0, True)
    h = layer(a1, h, wn1, ws1, b1, False)
    ne = h.shape[0] // (neg_ratio + 2)
    src_h, pos_dst, neg_dst = h[:ne], h[ne:2 * ne], h[2 * ne:]

    def mlp(x):
        x = jnp.maximum(x @ pw1 + pb1, 0.0)
        x = jnp.maximum(x @ pw2 + pb2, 0.0)
        return x @ pw3 + pb3

    return mlp(src_h * pos_dst), mlp(jnp.tile(src_h, (neg_ratio, 1)) * neg_dst)


# ------------------------------ setup / run ----------------------------------

def _row_normalized_adj(key, num_dst, num_src):
    """Random binary adjacency, row-normalized (DGL mean: 0-degree rows -> 0)."""
    a = (jax.random.uniform(key, (num_dst, num_src)) < 0.25).astype(jnp.float32)
    deg = jnp.sum(a, axis=1, keepdims=True)
    return a / jnp.maximum(deg, 1.0)


if __name__ == "__main__":
    key = jax.random.PRNGKey(0)
    dim_node, dim_out = 32, 32
    neg_sample_ratio = 1
    num_edge = 8
    num_dst1 = num_edge * (neg_sample_ratio + 2)     # 24 layer-1 dst nodes
    num_dst0 = 48                                    # layer-1 src = layer-0 dst
    num_src0 = 96                                    # layer-0 src nodes

    ks = jax.random.split(key, 12)
    h_src0 = jax.random.normal(ks[0], (num_src0, dim_node), jnp.float32)
    a0 = _row_normalized_adj(ks[1], num_dst0, num_src0)
    a1 = _row_normalized_adj(ks[2], num_dst1, num_dst0)

    def lin(k, din, dout, scale=0.1):
        return scale * jax.random.normal(k, (din, dout), jnp.float32)

    layer_params = (
        (lin(ks[3], dim_node, dim_out), lin(ks[4], dim_node, dim_out),
         0.01 * jax.random.normal(ks[5], (dim_out,), jnp.float32)),
        (lin(ks[6], dim_out, dim_out), lin(ks[7], dim_out, dim_out),
         0.01 * jax.random.normal(ks[8], (dim_out,), jnp.float32)),
    )
    pred_params = (
        lin(ks[9], dim_out, dim_out), jnp.zeros((dim_out,), jnp.float32),
        lin(ks[10], dim_out, dim_out), jnp.zeros((dim_out,), jnp.float32),
        lin(ks[11], dim_out, 1), jnp.zeros((1,), jnp.float32),
    )

    ref_pos, ref_neg = _reference_forward(h_src0, a0, a1, layer_params,
                                          pred_params, neg_sample_ratio)

    fwd = jax.jit(functools.partial(sage_forward,
                                    neg_sample_ratio=neg_sample_ratio))

    # f32 compute path: tight tolerance check of the fused kernel.
    prepped_f32 = prepare_sage_params(layer_params, pred_params, jnp.float32)
    p32, n32 = fwd(h_src0, a0, a1, prepped_f32)
    jax.block_until_ready((p32, n32))
    assert p32.shape == (num_edge, 1)
    assert n32.shape == (num_edge * neg_sample_ratio, 1)
    assert jnp.allclose(p32, ref_pos, rtol=1e-3, atol=1e-5)
    assert jnp.allclose(n32, ref_neg, rtol=1e-3, atol=1e-5)

    # default bf16 compute path (MXU-native on v5e/v6e/v7x): loose tolerance.
    prepped_bf16 = prepare_sage_params(layer_params, pred_params, jnp.bfloat16)
    pbf, nbf = fwd(h_src0, a0, a1, prepped_bf16)
    jax.block_until_ready((pbf, nbf))
    assert pbf.shape == (num_edge, 1)
    assert nbf.shape == (num_edge * neg_sample_ratio, 1)
    assert jnp.allclose(pbf, ref_pos, rtol=5e-2, atol=5e-2)
    assert jnp.allclose(nbf, ref_neg, rtol=5e-2, atol=5e-2)

    print("KERNEL_OK")
</pallas_src>

<mosaic_0001>
module attributes {stable_mosaic.version = 11 : i64} {
  func.func @_sage_fused_kernel(%arg0: memref<48x96xf32, #tpu.memory_space<vmem>>, %arg1: memref<96x128xf32, #tpu.memory_space<vmem>>, %arg2: memref<24x48xf32, #tpu.memory_space<vmem>>, %arg3: memref<48x1xf32, #tpu.memory_space<vmem>>, %arg4: memref<24x1xf32, #tpu.memory_space<vmem>>, %arg5: memref<256x128xf32, #tpu.memory_space<vmem>>, %arg6: memref<1x128xf32, #tpu.memory_space<vmem>>, %arg7: memref<256x128xf32, #tpu.memory_space<vmem>>, %arg8: memref<1x128xf32, #tpu.memory_space<vmem>>, %arg9: memref<128x128xf32, #tpu.memory_space<vmem>>, %arg10: memref<1x128xf32, #tpu.memory_space<vmem>>, %arg11: memref<128x128xf32, #tpu.memory_space<vmem>>, %arg12: memref<1x128xf32, #tpu.memory_space<vmem>>, %arg13: memref<1x128xf32, #tpu.memory_space<vmem>>, %arg14: memref<1x1xf32, #tpu.memory_space<vmem>>, %arg15: memref<16x128xf32, #tpu.memory_space<vmem>>) attributes {dimension_semantics = [], scalar_prefetch = 0 : i64, scratch_operands = 0 : i64, tpu.core_type = #tpu.core_type<tc>} {
    %c0 = arith.constant 0 : index
    %c0_0 = arith.constant 0 : index
    %0 = vector.load %arg0[%c0, %c0_0] : memref<48x96xf32, #tpu.memory_space<vmem>>, vector<48x96xf32>
    %c0_1 = arith.constant 0 : index
    %c0_2 = arith.constant 0 : index
    %1 = vector.load %arg1[%c0_1, %c0_2] : memref<96x128xf32, #tpu.memory_space<vmem>>, vector<96x128xf32>
    %c0_3 = arith.constant 0 : index
    %c0_4 = arith.constant 0 : index
    %2 = vector.load %arg5[%c0_3, %c0_4] : memref<256x128xf32, #tpu.memory_space<vmem>>, vector<256x128xf32>
    %c0_5 = arith.constant 0 : index
    %c0_6 = arith.constant 0 : index
    %3 = vector.load %arg6[%c0_5, %c0_6] : memref<1x128xf32, #tpu.memory_space<vmem>>, vector<1x128xf32>
    %c0_7 = arith.constant 0 : index
    %c0_8 = arith.constant 0 : index
    %4 = vector.load %arg3[%c0_7, %c0_8] : memref<48x1xf32, #tpu.memory_space<vmem>>, vector<48x1xf32>
    %cst = arith.constant dense<0.000000e+00> : vector<48x128xf32>
    %5 = tpu.matmul %0, %1, %cst {dimension_numbers = #tpu.dot_dimension_numbers<[1], [0], [0], [1], [0, 0, 1, 1], [], []>} : vector<48x96xf32>, vector<96x128xf32>, vector<48x128xf32> -> vector<48x128xf32>
    %6 = vector.extract_strided_slice %1 {offsets = [0, 0], sizes = [48, 128], strides = [1, 1]} : vector<96x128xf32> to vector<48x128xf32>
    %7 = tpu.concatenate %6, %5 in 1 : vector<48x128xf32>, vector<48x128xf32> -> vector<48x256xf32>
    %cst_9 = arith.constant dense<0.000000e+00> : vector<48x128xf32>
    %8 = tpu.matmul %7, %2, %cst_9 {dimension_numbers = #tpu.dot_dimension_numbers<[1], [0], [0], [1], [0, 0, 1, 1], [], []>} : vector<48x256xf32>, vector<256x128xf32>, vector<48x128xf32> -> vector<48x128xf32>
    %9 = vector.broadcast %3 : vector<1x128xf32> to vector<48x128xf32>
    %10 = arith.addf %8, %9 : vector<48x128xf32>
    %cst_10 = arith.constant 0.000000e+00 : f32
    %11 = vector.broadcast %cst_10 : f32 to vector<48x128xf32>
    %12 = arith.maximumf %10, %11 : vector<48x128xf32>
    %13 = vector.broadcast %4 : vector<48x1xf32> to vector<48x128xf32>
    %14 = arith.mulf %12, %13 : vector<48x128xf32>
    %c0_11 = arith.constant 0 : index
    %c0_12 = arith.constant 0 : index
    %15 = vector.load %arg2[%c0_11, %c0_12] : memref<24x48xf32, #tpu.memory_space<vmem>>, vector<24x48xf32>
    %c0_13 = arith.constant 0 : index
    %c0_14 = arith.constant 0 : index
    %16 = vector.load %arg7[%c0_13, %c0_14] : memref<256x128xf32, #tpu.memory_space<vmem>>, vector<256x128xf32>
    %c0_15 = arith.constant 0 : index
    %c0_16 = arith.constant 0 : index
    %17 = vector.load %arg8[%c0_15, %c0_16] : memref<1x128xf32, #tpu.memory_space<vmem>>, vector<1x128xf32>
    %c0_17 = arith.constant 0 : index
    %c0_18 = arith.constant 0 : index
    %18 = vector.load %arg4[%c0_17, %c0_18] : memref<24x1xf32, #tpu.memory_space<vmem>>, vector<24x1xf32>
    %cst_19 = arith.constant dense<0.000000e+00> : vector<24x128xf32>
    %19 = tpu.matmul %15, %14, %cst_19 {dimension_numbers = #tpu.dot_dimension_numbers<[1], [0], [0], [1], [0, 0, 1, 1], [], []>} : vector<24x48xf32>, vector<48x128xf32>, vector<24x128xf32> -> vector<24x128xf32>
    %20 = vector.extract_strided_slice %14 {offsets = [0, 0], sizes = [24, 128], strides = [1, 1]} : vector<48x128xf32> to vector<24x128xf32>
    %21 = tpu.concatenate %20, %19 in 1 : vector<24x128xf32>, vector<24x128xf32> -> vector<24x256xf32>
    %cst_20 = arith.constant dense<0.000000e+00> : vector<24x128xf32>
    %22 = tpu.matmul %21, %16, %cst_20 {dimension_numbers = #tpu.dot_dimension_numbers<[1], [0], [0], [1], [0, 0, 1, 1], [], []>} : vector<24x256xf32>, vector<256x128xf32>, vector<24x128xf32> -> vector<24x128xf32>
    %23 = vector.broadcast %17 : vector<1x128xf32> to vector<24x128xf32>
    %24 = arith.addf %22, %23 : vector<24x128xf32>
    %25 = vector.broadcast %18 : vector<24x1xf32> to vector<24x128xf32>
    %26 = arith.mulf %24, %25 : vector<24x128xf32>
    %27 = vector.extract_strided_slice %26 {offsets = [0, 0], sizes = [8, 128], strides = [1, 1]} : vector<24x128xf32> to vector<8x128xf32>
    %28 = vector.extract_strided_slice %26 {offsets = [8, 0], sizes = [16, 128], strides = [1, 1]} : vector<24x128xf32> to vector<16x128xf32>
    %29 = vector.shape_cast %28 : vector<16x128xf32> to vector<2x8x128xf32>
    %30 = vector.shape_cast %27 : vector<8x128xf32> to vector<1x8x128xf32>
    %31 = vector.shape_cast %30 : vector<1x8x128xf32> to vector<1x8x128xf32>
    %32 = vector.broadcast %31 : vector<1x8x128xf32> to vector<2x8x128xf32>
    %33 = arith.mulf %32, %29 : vector<2x8x128xf32>
    %34 = vector.shape_cast %33 : vector<2x8x128xf32> to vector<16x128xf32>
    %c0_21 = arith.constant 0 : index
    %c0_22 = arith.constant 0 : index
    %35 = vector.load %arg9[%c0_21, %c0_22] : memref<128x128xf32, #tpu.memory_space<vmem>>, vector<128x128xf32>
    %cst_23 = arith.constant dense<0.000000e+00> : vector<16x128xf32>
    %36 = tpu.matmul %34, %35, %cst_23 {dimension_numbers = #tpu.dot_dimension_numbers<[1], [0], [0], [1], [0, 0, 1, 1], [], []>} : vector<16x128xf32>, vector<128x128xf32>, vector<16x128xf32> -> vector<16x128xf32>
    %c0_24 = arith.constant 0 : index
    %c0_25 = arith.constant 0 : index
    %37 = vector.load %arg10[%c0_24, %c0_25] : memref<1x128xf32, #tpu.memory_space<vmem>>, vector<1x128xf32>
    %38 = vector.broadcast %37 : vector<1x128xf32> to vector<16x128xf32>
    %39 = arith.addf %36, %38 : vector<16x128xf32>
    %cst_26 = arith.constant 0.000000e+00 : f32
    %40 = vector.broadcast %cst_26 : f32 to vector<16x128xf32>
    %41 = arith.maximumf %39, %40 : vector<16x128xf32>
    %c0_27 = arith.constant 0 : index
    %c0_28 = arith.constant 0 : index
    %42 = vector.load %arg11[%c0_27, %c0_28] : memref<128x128xf32, #tpu.memory_space<vmem>>, vector<128x128xf32>
    %cst_29 = arith.constant dense<0.000000e+00> : vector<16x128xf32>
    %43 = tpu.matmul %41, %42, %cst_29 {dimension_numbers = #tpu.dot_dimension_numbers<[1], [0], [0], [1], [0, 0, 1, 1], [], []>} : vector<16x128xf32>, vector<128x128xf32>, vector<16x128xf32> -> vector<16x128xf32>
    %c0_30 = arith.constant 0 : index
    %c0_31 = arith.constant 0 : index
    %44 = vector.load %arg12[%c0_30, %c0_31] : memref<1x128xf32, #tpu.memory_space<vmem>>, vector<1x128xf32>
    %45 = vector.broadcast %44 : vector<1x128xf32> to vector<16x128xf32>
    %46 = arith.addf %43, %45 : vector<16x128xf32>
    %cst_32 = arith.constant 0.000000e+00 : f32
    %47 = vector.broadcast %cst_32 : f32 to vector<16x128xf32>
    %48 = arith.maximumf %46, %47 : vector<16x128xf32>
    %c0_33 = arith.constant 0 : index
    %c0_34 = arith.constant 0 : index
    %49 = vector.load %arg13[%c0_33, %c0_34] : memref<1x128xf32, #tpu.memory_space<vmem>>, vector<1x128xf32>
    %50 = vector.broadcast %49 : vector<1x128xf32> to vector<16x128xf32>
    %51 = arith.mulf %48, %50 : vector<16x128xf32>
    %cst_35 = arith.constant dense<0.000000e+00> : vector<16xf32>
    %52 = vector.multi_reduction <add>, %51, %cst_35 [1] : vector<16x128xf32> to vector<16xf32>
    %53 = vector.shape_cast %52 : vector<16xf32> to vector<16x1xf32>
    %c0_36 = arith.constant 0 : index
    %c0_37 = arith.constant 0 : index
    %54 = vector.load %arg14[%c0_36, %c0_37] : memref<1x1xf32, #tpu.memory_space<vmem>>, vector<1x1xf32>
    %55 = vector.broadcast %54 : vector<1x1xf32> to vector<16x1xf32>
    %56 = arith.addf %53, %55 : vector<16x1xf32>
    %57 = vector.shape_cast %56 : vector<16x1xf32> to vector<16x1xf32>
    %58 = vector.broadcast %57 : vector<16x1xf32> to vector<16x128xf32>
    %c0_38 = arith.constant 0 : index
    %c0_39 = arith.constant 0 : index
    %59 = vector.load %arg15[%c0_38, %c0_39] : memref<16x128xf32, #tpu.memory_space<vmem>>, vector<16x128xf32>
    tpu.vector_store %arg15[%c0_38, %c0_39], %58 {strides = array<i32>} : memref<16x128xf32, #tpu.memory_space<vmem>>, vector<16x128xf32>,
    return
  }
}

</mosaic_0001>

<bundles_post_ra>
// kernel: sage_forward.1
= control target key start
LH: loop header
LB: loop body
LE: loop exit
PB: predicated region body
PF: predicated region fallthrough
CT: control target
= control target key end

     0   :  { %s1994_s0 = inlined_call_operand.vmem [shape: f32[48,96], index: 0, kind: input, shape index: {}]   ;;  %s1995_s1 = inlined_call_operand.vmem [shape: f32[96,128], index: 1, kind: input, shape index: {}]   ;;  %s1996_s2 = inlined_call_operand.hbm [shape: f32[24,48], index: 2, kind: input, shape index: {}]   ;;  %s1997_s3 = inlined_call_operand.vmem [shape: f32[48,1], index: 3, kind: input, shape index: {}]   ;;  %s1998_s4 = inlined_call_operand.vmem [shape: f32[24,1], index: 4, kind: input, shape index: {}]   ;;  %s1999_s5 = inlined_call_operand.vmem [shape: f32[256,128], index: 5, kind: input, shape index: {}]   ;;  %s2000_s6 = inlined_call_operand.vmem [shape: f32[1,128], index: 6, kind: input, shape index: {}]   ;;  %s2001_s7 = inlined_call_operand.hbm [shape: f32[256,128], index: 7, kind: input, shape index: {}]   ;;  %s2002_s8 = inlined_call_operand.vmem [shape: f32[1,128], index: 8, kind: input, shape index: {}]   ;;  %s2003_s9 = inlined_call_operand.vmem [shape: f32[128,128], index: 9, kind: input, shape index: {}]   ;;  %s2004_s10 = inlined_call_operand.hbm [shape: f32[1,128], index: 10, kind: input, shape index: {}]   ;;  %s2005_s11 = inlined_call_operand.hbm [shape: f32[128,128], index: 11, kind: input, shape index: {}]   ;;  %s2006_s12 = inlined_call_operand.hbm [shape: f32[1,128], index: 12, kind: input, shape index: {}]   ;;  %s2007_s13 = inlined_call_operand.hbm [shape: f32[1,128], index: 13, kind: input, shape index: {}]   ;;  %s2008_s14 = inlined_call_operand.<no memory space> [shape: f32[1,1], index: 14, kind: input, shape index: {}]   ;;  %s2009_s15 = inlined_call_operand.vmem [shape: f32[16,128], index: 15, kind: output, shape index: {}]  }
   0x1   :  { %v20_v0 = vstv %s2008_s14 }
   0x2   :  { %21 = vst [vmem:[#allocation2] sm:$0x1] %v20_v0 }
   0x3   :  { %22 = vsyncpa [#allocation4], 0 }
   0x4   :  { %23 = vsyncpa [#allocation6], 0 }
   0x5   :  { %24 = vsyncpa [#allocation9], 0 }
   0x6   :  { %25 = vsyncpa [#allocation12], 0  ;;  %s1527_s20 = smov [#allocation5]   ;;  %s1528_s22 = smov [#allocation8]  }
   0x7   :  { %s55_s21 = sshll.u32 %s1527_s20, 4  ;;  %s81_s23 = sshll.u32 %s1528_s22, 4  ;;  %s56_s21 = int_to_ptr.vmem [resolvable:$true] %s55_s21  ;;  %s1622_s23 = int_to_ptr.vmem [resolvable:$true] %s81_s23 }
   0x8   :  { %s1387_s26 = scalar_lea.hbm %s2001_s7, 4096 }
   0x9   :  { %p1388_p0 = scmp.ne.s32.totalorder %s2001_s7, %s1387_s26  ;;  %p1391_p1 = scmp.lt.u32.totalorder %s1387_s26, %s2001_s7 }
   0xb   :  { %p1393_p2 = pnand %p1391_p1, %p1388_p0 }
   0xd   :  { %1396 = shalt.err (!%p1393_p2)
}
   0xe   :  { %s1397_s30 = scalar_lea.vmem %s56_s21, 4096  ;;  %p1402_p4 = scmp.lt.s32.totalorder %s56_s21, %s56_s21 }
   0xf   :  { %p1398_p3 = scmp.ne.s32.totalorder %s56_s21, %s1397_s30  ;;  %p1403_p5 = scmp.lt.s32.totalorder %s1397_s30, %s1397_s30 }
  0x11   :  { %p1404_p6 = por %p1403_p5, %p1402_p4 }
  0x13   :  { %p1405_p7 = pnand %p1404_p6, %p1398_p3 }
  0x15   :  { %1408 = shalt.err (!%p1405_p7)
}
  0x16   :  { %s1529_s16 = smov 128   ;;  %s1530_s17 = smov 8  }
  0x17   :  { %61 = dma.hbm_to_vmem [thread:$0]  %s2001_s7, 4096, %s56_s21, [#allocation6], %s1529_s16, %s1529_s16, %s1530_s17  }
  0x18   :  { %s1409_s24 = scalar_lea.hbm %s2005_s11, 2048 }
  0x19   :  { %p1410_p8 = scmp.ne.s32.totalorder %s2005_s11, %s1409_s24  ;;  %p1413_p9 = scmp.lt.u32.totalorder %s1409_s24, %s2005_s11 }
  0x1b   :  { %p1415_p10 = pnand %p1413_p9, %p1410_p8 }
  0x1d   :  { %1418 = shalt.err (!%p1415_p10)
}
  0x1e   :  { %s1419_s14 = scalar_lea.vmem %s1622_s23, 2048  ;;  %p1424_p12 = scmp.lt.s32.totalorder %s1622_s23, %s1622_s23 }
  0x1f   :  { %p1420_p11 = scmp.ne.s32.totalorder %s1622_s23, %s1419_s14  ;;  %p1425_p13 = scmp.lt.s32.totalorder %s1419_s14, %s1419_s14 }
  0x21   :  { %p1426_p0 = por %p1425_p13, %p1424_p12 }
  0x23   :  { %p1427_p1 = pnand %p1426_p0, %p1420_p11 }
  0x25   :  { %1430 = shalt.err (!%p1427_p1)
}
  0x26   :  { %87 = dma.hbm_to_vmem [thread:$0]  %s2005_s11, 2048, %s1622_s23, [#allocation9], %s1529_s16, %s1529_s16, %s1530_s17  }
  0x27   :  { %s1531_s29 = smov [#allocation3]   ;;  %s1532_s18 = smov [#allocation7]  }
  0x28   :  { %s35_s30 = sshll.u32 %s1531_s29, 4  ;;  %s72_s19 = sshll.u32 %s1532_s18, 4  ;;  %s36_s30 = int_to_ptr.vmem [resolvable:$true] %s35_s30  ;;  %s73_s19 = int_to_ptr.vmem [resolvable:$true] %s72_s19 }
  0x29   :  { %s1431_s24 = scalar_lea.hbm %s1996_s2, 384 }
  0x2a   :  { %p1432_p2 = scmp.ne.s32.totalorder %s1996_s2, %s1431_s24  ;;  %p1435_p3 = scmp.lt.u32.totalorder %s1431_s24, %s1996_s2 }
  0x2c   :  { %p1437_p4 = pnand %p1435_p3, %p1432_p2 }
  0x2e   :  { %1440 = shalt.err (!%p1437_p4)
}
  0x2f   :  { %s1441_s11 = scalar_lea.vmem %s36_s30, 384  ;;  %p1446_p6 = scmp.lt.s32.totalorder %s36_s30, %s36_s30 }
  0x30   :  { %p1442_p5 = scmp.ne.s32.totalorder %s36_s30, %s1441_s11  ;;  %p1447_p7 = scmp.lt.s32.totalorder %s1441_s11, %s1441_s11 }
  0x32   :  { %p1448_p8 = por %p1447_p7, %p1446_p6 }
  0x34   :  { %p1449_p9 = pnand %p1448_p8, %p1442_p5 }
  0x36   :  { %1452 = shalt.err (!%p1449_p9)
}
  0x37   :  { %41 = dma.hbm_to_vmem [thread:$0]  %s1996_s2, 384, %s36_s30, [#allocation4], %s1529_s16, %s1529_s16, %s1530_s17  }
  0x38   :  { %s1453_s29 = scalar_lea.hbm %s2004_s10, 16 }
  0x39   :  { %p1454_p10 = scmp.ne.s32.totalorder %s2004_s10, %s1453_s29  ;;  %p1457_p11 = scmp.lt.u32.totalorder %s1453_s29, %s2004_s10 }
  0x3b   :  { %p1459_p12 = pnand %p1457_p11, %p1454_p10 }
  0x3d   :  { %1462 = shalt.err (!%p1459_p12)
}
  0x3e   :  { %s1463_s25 = scalar_lea.vmem %s73_s19, 16  ;;  %s1467_s26 = scalar_lea.vmem %s73_s19, 32 }
  0x3f   :  { %p1464_p13 = scmp.ne.s32.totalorder %s73_s19, %s1463_s25  ;;  %p1468_p0 = scmp.lt.s32.totalorder %s73_s19, %s73_s19 }
  0x40   :  { %p1469_p1 = scmp.lt.s32.totalorder %s1467_s26, %s1463_s25 }
  0x42   :  { %p1470_p2 = por %p1469_p1, %p1468_p0 }
  0x44   :  { %p1471_p3 = pnand %p1470_p2, %p1464_p13 }
  0x46   :  { %1474 = shalt.err (!%p1471_p3)
}
  0x47   :  { %75 = dma.hbm_to_vmem [thread:$0]  %s2004_s10, 16, %s73_s19, [#allocation6]  }
  0x48   :  { %s1533_s17 = smov [#allocation10]   ;;  %s1534_s27 = smov [#allocation11]  }
  0x49   :  { %s94_s30 = sshll.u32 %s1533_s17, 4  ;;  %s104_s28 = sshll.u32 %s1534_s27, 4  ;;  %s95_s30 = int_to_ptr.vmem [resolvable:$true] %s94_s30  ;;  %s105_s28 = int_to_ptr.vmem [resolvable:$true] %s104_s28 }
  0x4a   :  { %s1475_s14 = scalar_lea.hbm %s2006_s12, 16 }
  0x4b   :  { %p1476_p4 = scmp.ne.s32.totalorder %s2006_s12, %s1475_s14  ;;  %p1479_p5 = scmp.lt.u32.totalorder %s1475_s14, %s2006_s12 }
  0x4d   :  { %p1481_p6 = pnand %p1479_p5, %p1476_p4 }
  0x4f   :  { %1484 = shalt.err (!%p1481_p6)
}
  0x50   :  { %s1485_s10 = scalar_lea.vmem %s95_s30, 16  ;;  %s1489_s19 = scalar_lea.vmem %s95_s30, 32 }
  0x51   :  { %p1486_p7 = scmp.ne.s32.totalorder %s95_s30, %s1485_s10  ;;  %p1490_p8 = scmp.lt.s32.totalorder %s95_s30, %s95_s30 }
  0x52   :  { %p1491_p9 = scmp.lt.s32.totalorder %s1489_s19, %s1485_s10 }
  0x54   :  { %p1492_p10 = por %p1491_p9, %p1490_p8 }
  0x56   :  { %p1493_p11 = pnand %p1492_p10, %p1486_p7 }
  0x58   :  { %1496 = shalt.err (!%p1493_p11)
}
  0x59   :  { %97 = dma.hbm_to_vmem [thread:$0]  %s2006_s12, 16, %s95_s30, [#allocation9]  }
  0x5a   :  { %s1497_s26 = scalar_lea.hbm %s2007_s13, 16 }
  0x5b   :  { %p1498_p12 = scmp.ne.s32.totalorder %s2007_s13, %s1497_s26  ;;  %p1501_p13 = scmp.lt.u32.totalorder %s1497_s26, %s2007_s13 }
  0x5d   :  { %p1503_p0 = pnand %p1501_p13, %p1498_p12 }
  0x5f   :  { %1506 = shalt.err (!%p1503_p0)
}
  0x60   :  { %s1507_s11 = scalar_lea.vmem %s105_s28, 16  ;;  %s1511_s23 = scalar_lea.vmem %s105_s28, 32 }
  0x61   :  { %p1508_p1 = scmp.ne.s32.totalorder %s105_s28, %s1507_s11  ;;  %p1512_p2 = scmp.lt.s32.totalorder %s105_s28, %s105_s28 }
  0x62   :  { %p1513_p3 = scmp.lt.s32.totalorder %s1511_s23, %s1507_s11 }
  0x64   :  { %p1514_p4 = por %p1513_p3, %p1512_p2 }
  0x66   :  { %p1515_p5 = pnand %p1514_p4, %p1508_p1 }
  0x68   :  { %1518 = shalt.err (!%p1515_p5)
}
  0x69   :  { %107 = dma.hbm_to_vmem [thread:$0]  %s2007_s13, 16, %s105_s28, [#allocation12]  }
  0x6a   :  { %1519 = dma.done.wait [#allocation4], 384  }
  0x6b   :  { %1520 = vsyncadd [#allocation4], 4294966912 }
  0x6c   :  { %1521 = dma.done.wait [#allocation6], 4112  }
  0x6d   :  { %1522 = vsyncadd [#allocation6], 4294963184 }
  0x6e   :  { %1523 = dma.done.wait [#allocation9], 2064  }
  0x6f   :  { %1524 = vsyncadd [#allocation9], 4294965232 }
  0x70   :  { %1525 = dma.done.wait [#allocation12], 16  }
  0x71   :  { %1526 = vsyncadd [#allocation12], 4294967280  ;;  %v1713_v1 = vld [vmem:[%s1995_s1] sm:$0xff]  ;;  %v1718_v2 = vld [vmem:[%s1995_s1 + $0x8] sm:$0xff]  ;;  %vm185_vm0 = vcmask 785408   ;;  %vm1537_vm1 = vmmov 0  }
  0x72   :  { %v1723_v3 = vld [vmem:[%s1995_s1 + $0x10] sm:$0xff]  ;;  %v1212_v4 = vpack.c.bf16 %v1718_v2, %v1713_v1  ;;  %v1730_v5 = vld [vmem:[%s1995_s1 + $0x18] sm:$0xff]  ;;  %v1737_v7 = vld [vmem:[%s1995_s1 + $0x20] sm:$0xff]  ;;  %vm481_vm2 = vcmask 392192  }
  0x73   :  { %v1216_v6 = vpack.c.bf16 %v1730_v5, %v1723_v3  ;;  %v1742_v8 = vld [vmem:[%s1995_s1 + $0x28] sm:$0xff]  ;;  %v128_v9 = vld [vmem:[%s1994_s0] sm:$0xff]  ;;  %v140_v11 = vld [vmem:[%s1995_s1 + $0x30] sm:$0xff] }
  0x74   :  { %1213 = vmatprep.subr.bf16.mxu0 %v1212_v4  ;;  %v1220_v10 = vpack.c.bf16 %v1742_v8, %v1737_v7  ;;  %v141_v12 = vld [vmem:[%s1995_s1 + $0x38] sm:$0xff]  ;;  %1112 = vmatprep.mubr.msk.f32.mxu0 %vm185_vm0, %v128_v9  ;;  %v162_v13 = vld [vmem:[%s1999_s5 + $0x80] sm:$0xff]  ;;  %v163_v14 = vld [vmem:[%s1999_s5 + $0x88] sm:$0xff] }
  0x75   :  { %1215 = vmatpush3.bf16.msra.mxu0 %v1212_v4  ;;  %v146_v15 = vld [vmem:[%s1999_s5] sm:$0xff]  ;;  %v1236_v16 = vpack.c.bf16 %v163_v14, %v162_v13  ;;  %v147_v17 = vld [vmem:[%s1999_s5 + $0x8] sm:$0xff]  ;;  %v164_v18 = vld [vmem:[%s1999_s5 + $0x90] sm:$0xff]  ;;  %v1224_v25 = vpack.c.bf16 %v141_v12, %v140_v11 }
  0x76   :  { %1217 = vmatprep.subr.bf16.mxu0 %v1216_v6  ;;  %v165_v19 = vld [vmem:[%s1999_s5 + $0x98] sm:$0xff]  ;;  %v1238_v20 = vpack.c.bf16 %v147_v17, %v146_v15  ;;  %v148_v22 = vld [vmem:[%s1999_s5 + $0x10] sm:$0xff]  ;;  %v166_v24 = vld [vmem:[%s1999_s5 + $0xa0] sm:$0xff]  ;;  %v1535_v17 = vmov 0  }
  0x77   :  { %v1240_v21 = vpack.c.bf16 %v165_v19, %v164_v18  ;;  %v149_v23 = vld [vmem:[%s1999_s5 + $0x18] sm:$0xff]  ;;  %1237 = vmatprep.subr.bf16.mxu1 %v1236_v16  ;;  %v167_v26 = vld [vmem:[%s1999_s5 + $0xa8] sm:$0xff]  ;;  %v142_v27 = vld [vmem:[%s1995_s1 + $0x40] sm:$0xff]  ;;  %1385 = vset.pattern.permute.xlu0 %v1535_v17 }
  0x78   :  { %v143_v28 = vld [vmem:[%s1995_s1 + $0x48] sm:$0xff]  ;;  %1239 = vmatpush3.bf16.msra.mxu1 %v1238_v20  ;;  %v1242_v29 = vpack.c.bf16 %v149_v23, %v148_v22  ;;  %v1244_v30 = vpack.c.bf16 %v167_v26, %v166_v24  ;;  %v150_v31 = vld [vmem:[%s1999_s5 + $0x20] sm:$0xff]  ;;  %v168_v33 = vld [vmem:[%s1999_s5 + $0xb0] sm:$0xff]  ;;  %1386 = vset.pattern.permute.xlu1 %v1535_v17 }
  0x79   :  { %1219 = vmatpush3.bf16.msra.mxu0 %v1216_v6  ;;  %1241 = vmatprep.subr.bf16.mxu1 %v1240_v21  ;;  %v151_v32 = vld [vmem:[%s1999_s5 + $0x28] sm:$0xff]  ;;  %v169_v34 = vld [vmem:[%s1999_s5 + $0xb8] sm:$0xff]  ;;  %v1228_v35 = vpack.c.bf16 %v143_v28, %v142_v27  ;;  %v144_v36 = vld [vmem:[%s1995_s1 + $0x50] sm:$0xff] }
  0x7a   :  { %1221 = vmatprep.subr.bf16.mxu0 %v1220_v10  ;;  %v145_v37 = vld [vmem:[%s1995_s1 + $0x58] sm:$0xff]  ;;  %v1246_v38 = vpack.c.bf16 %v151_v32, %v150_v31  ;;  %v1248_v39 = vpack.c.bf16 %v169_v34, %v168_v33  ;;  %v152_v40 = vld [vmem:[%s1999_s5 + $0x30] sm:$0xff]  ;;  %v170_v42 = vld [vmem:[%s1999_s5 + $0xc0] sm:$0xff]  ;;  %v1538_v31 = vmov 0.0  }
  0x7b   :  { %v153_v41 = vld [vmem:[%s1999_s5 + $0x38] sm:$0xff]  ;;  %v171_v43 = vld [vmem:[%s1999_s5 + $0xc8] sm:$0xff]  ;;  %v1232_v44 = vpack.c.bf16 %v145_v37, %v144_v36  ;;  %v154_v47 = vld [vmem:[%s1999_s5 + $0x40] sm:$0xff] }
  0x7c   :  { %1243 = vmatpush3.bf16.msra.mxu1 %v1242_v29  ;;  %v1250_v45 = vpack.c.bf16 %v153_v41, %v152_v40  ;;  %v1252_v46 = vpack.c.bf16 %v171_v43, %v170_v42  ;;  %v155_v48 = vld [vmem:[%s1999_s5 + $0x48] sm:$0xff]  ;;  %v172_v49 = vld [vmem:[%s1999_s5 + $0xd0] sm:$0xff]  ;;  %v173_v50 = vld [vmem:[%s1999_s5 + $0xd8] sm:$0xff] }
  0x7d   :  { %1223 = vmatpush3.bf16.msra.mxu0 %v1220_v10  ;;  %1245 = vmatprep.subr.bf16.mxu1 %v1244_v30  ;;  %v1254_v51 = vpack.c.bf16 %v155_v48, %v154_v47  ;;  %v1256_v52 = vpack.c.bf16 %v173_v50, %v172_v49  ;;  %v156_v53 = vld [vmem:[%s1999_s5 + $0x50] sm:$0xff]  ;;  %v157_v54 = vld [vmem:[%s1999_s5 + $0x58] sm:$0xff]  ;;  %v129_v55 = vld [vmem:[%s1994_s0 + $0x8] sm:$0xff] }
  0x7e   :  { %1225 = vmatprep.subr.bf16.mxu0 %v1224_v25  ;;  %v174_v56 = vld [vmem:[%s1999_s5 + $0xe0] sm:$0xff]  ;;  %v175_v57 = vld [vmem:[%s1999_s5 + $0xe8] sm:$0xff]  ;;  %v130_v58 = vld [vmem:[%s1994_s0 + $0x10] sm:$0xff]  ;;  %v1258_v59 = vpack.c.bf16 %v157_v54, %v156_v53 }
  0x7f   :  { %v1260_v60 = vpack.c.bf16 %v175_v57, %v174_v56  ;;  %v158_v61 = vld [vmem:[%s1999_s5 + $0x60] sm:$0xff]  ;;  %v159_v62 = vld [vmem:[%s1999_s5 + $0x68] sm:$0xff]  ;;  %v131_v63 = vld [vmem:[%s1994_s0 + $0x18] sm:$0xff] }
  0x80   :  { %1247 = vmatpush3.bf16.msra.mxu1 %v1246_v38  ;;  %v176_v0 = vld [vmem:[%s1999_s5 + $0xf0] sm:$0xff]  ;;  %v177_v4 = vld [vmem:[%s1999_s5 + $0xf8] sm:$0xff]  ;;  %v132_v6 = vld [vmem:[%s1994_s0 + $0x20] sm:$0xff]  ;;  %v1262_v9 = vpack.c.bf16 %v159_v62, %v158_v61 }
  0x81   :  { %1227 = vmatpush3.bf16.msra.mxu0 %v1224_v25  ;;  %1249 = vmatprep.subr.bf16.mxu1 %v1248_v39  ;;  %v1264_v10 = vpack.c.bf16 %v177_v4, %v176_v0  ;;  %v133_v11 = vld [vmem:[%s1994_s0 + $0x28] sm:$0xff]  ;;  %v160_v12 = vld [vmem:[%s1999_s5 + $0x70] sm:$0xff]  ;;  %v161_v13 = vld [vmem:[%s1999_s5 + $0x78] sm:$0xff] }
  0x82   :  { %1229 = vmatprep.subr.bf16.mxu0 %v1228_v35  ;;  %v1266_v14 = vpack.c.bf16 %v161_v13, %v160_v12  ;;  %v179_v15 = vld [vmem:[%s1997_s3] sm:$0xff]  ;;  %v181_v16 = vld [vmem:[%s1997_s3 + $0x10] sm:$0xff]  ;;  %v180_v18 = vld [vmem:[%s1997_s3 + $0x8] sm:$0xff] }
  0x83   :  { %408 = vperm.xlu0 %1385, %v179_v15   ;;  %418 = vperm.xlu1 %1386, %v181_v16   ;;  %v182_v19 = vld [vmem:[%s1997_s3 + $0x18] sm:$0xff]  ;;  %v183_v20 = vld [vmem:[%s1997_s3 + $0x20] sm:$0xff]  ;;  %v184_v21 = vld [vmem:[%s1997_s3 + $0x28] sm:$0xff] }
  0x84   :  { %1251 = vmatpush3.bf16.msra.mxu1 %v1250_v45  ;;  %v478_v22 = vld [vmem:[%s1998_s4] sm:$0xff]  ;;  %v479_v23 = vld [vmem:[%s1998_s4 + $0x8] sm:$0xff]  ;;  %v480_v24 = vld [vmem:[%s1998_s4 + $0x10] sm:$0xff] }
  0x85   :  { %1231 = vmatpush3.bf16.msra.mxu0 %v1228_v35  ;;  %1253 = vmatprep.subr.bf16.mxu1 %v1252_v46  ;;  %v462_v32 = vld [vmem:[#allocation5 + $0x88] sm:$0xff]  ;;  %v464_v35 = vld [vmem:[#allocation5 + $0x98] sm:$0xff]  ;;  %v447_v37 = vld [vmem:[#allocation5 + $0x10] sm:$0xff] }
  0x86   :  { %1233 = vmatprep.subr.bf16.mxu0 %v1232_v44  ;;  %v446_v34 = vld [vmem:[#allocation5 + $0x8] sm:$0xff]  ;;  %v448_v38 = vld [vmem:[#allocation5 + $0x18] sm:$0xff]  ;;  %v449_v42 = vld [vmem:[#allocation5 + $0x20] sm:$0xff] }
  0x87   :  { %413 = vperm.xlu0 %1385, %v180_v18   ;;  %423 = vperm.xlu1 %1386, %v182_v19   ;;  %v466_v39 = vld [vmem:[#allocation5 + $0xa8] sm:$0xff]  ;;  %v1283_v40 = vpack.c.bf16 %v448_v38, %v447_v37  ;;  %v468_v45 = vld [vmem:[#allocation5 + $0xb8] sm:$0xff]  ;;  %v451_v48 = vld [vmem:[#allocation5 + $0x30] sm:$0xff] }
  0x88   :  { %1255 = vmatpush3.bf16.msra.mxu1 %v1254_v51  ;;  %v450_v43 = vld [vmem:[#allocation5 + $0x28] sm:$0xff]  ;;  %v452_v49 = vld [vmem:[#allocation5 + $0x38] sm:$0xff]  ;;  %v469_v50 = vld [vmem:[#allocation5 + $0xc0] sm:$0xff] }
  0x89   :  { %1235 = vmatpush3.bf16.msra.mxu0 %v1232_v44  ;;  %1257 = vmatprep.subr.bf16.mxu1 %v1256_v52  ;;  %v467_v44 = vld [vmem:[#allocation5 + $0xb0] sm:$0xff]  ;;  %v1287_v46 = vpack.c.bf16 %v450_v43, %v449_v42  ;;  %v470_v51 = vld [vmem:[#allocation5 + $0xc8] sm:$0xff]  ;;  %v1291_v52 = vpack.c.bf16 %v452_v49, %v451_v48  ;;  %v453_v54 = vld [vmem:[#allocation5 + $0x40] sm:$0xff] }
  0x8a   :  { %v1289_v47 = vpack.c.bf16 %v468_v45, %v467_v44  ;;  %v1293_v53 = vpack.c.bf16 %v470_v51, %v469_v50  ;;  %v471_v56 = vld [vmem:[#allocation5 + $0xd0] sm:$0xff]  ;;  %v472_v57 = vld [vmem:[#allocation5 + $0xd8] sm:$0xff]  ;;  %v473_v62 = vld [vmem:[#allocation5 + $0xe0] sm:$0xff] }
  0x8b   :  { %428 = vperm.xlu0 %1385, %v183_v20   ;;  %433 = vperm.xlu1 %1386, %v184_v21   ;;  %v456_v61 = vld [vmem:[#allocation5 + $0x58] sm:$0xff]  ;;  %v925_v18 = vld [vmem:[%s2000_s6] ss:$0 sm:$0xff] }
  0x8c   :  { %1113 = vmatmul.mubr.msk.f32.vlgmr.msra.gmra.mrb[0].mxu0 %vm185_vm0, %v129_v55  ;;  %1259 = vmatpush3.bf16.msra.mxu1 %v1258_v59  ;;  %v454_v55 = vld [vmem:[#allocation5 + $0x48] sm:$0xff]  ;;  %v1297_v59 = vpack.c.bf16 %v472_v57, %v471_v56  ;;  %v460_v15 = vld [vmem:[#allocation5 + $0x78] sm:$0xff] }
  0x8d   :  { %1115 = vmatprep.mubr.msk.f32.mxu0 %vm185_vm0, %v130_v58  ;;  %1261 = vmatprep.subr.bf16.mxu1 %v1260_v60  ;;  %v1295_v58 = vpack.c.bf16 %v454_v55, %v453_v54  ;;  %v455_v60 = vld [vmem:[#allocation5 + $0x50] sm:$0xff] }
  0x8e   :  { %v1299_v0 = vpack.c.bf16 %v456_v61, %v455_v60  ;;  %v443_v60 = vld [vmem:[#allocation3 + $0x8] sm:$0xff]  ;;  %v444_v61 = vld [vmem:[#allocation3 + $0x10] sm:$0xff] }
  0x8f   :  { %659 = vperm.xlu0 %1385, %v478_v22   ;;  %664 = vperm.xlu1 %1386, %v479_v23  }
  0x90   :  { %1116 = vmatmul.mubr.msk.f32.gmra.mrb[2].mxu0 %vm185_vm0, %v131_v63  ;;  %1263 = vmatpush3.bf16.msra.mxu1 %v1262_v9  ;;  %v474_v63 = vld [vmem:[#allocation5 + $0xe8] sm:$0xff] }
  0x91   :  { %1118 = vmatprep.mubr.msk.f32.mxu0 %vm185_vm0, %v132_v6  ;;  %1265 = vmatprep.subr.bf16.mxu1 %v1264_v10  ;;  %v1301_v4 = vpack.c.bf16 %v474_v63, %v473_v62  ;;  %v457_v6 = vld [vmem:[#allocation5 + $0x60] sm:$0xff]  ;;  %v458_v9 = vld [vmem:[#allocation5 + $0x68] sm:$0xff]  ;;  %v475_v10 = vld [vmem:[#allocation5 + $0xf0] sm:$0xff] }
  0x92   :  { %v1303_v12 = vpack.c.bf16 %v458_v9, %v457_v6  ;;  %v678_v62 = vld [vmem:[%s2003_s9 + $0x8] sm:$0xff]  ;;  %v679_v63 = vld [vmem:[%s2003_s9 + $0x10] sm:$0xff]  ;;  %v681_v6 = vld [vmem:[%s2003_s9 + $0x20] sm:$0xff] }
  0x93   :  { %669 = vperm.xlu0 %1385, %v480_v24   ;;  %v682_v9 = vld [vmem:[%s2003_s9 + $0x28] sm:$0xff] }
  0x94   :  { %1119 = vmatmul.mubr.msk.f32.gmra.mrb[4].mxu0 %vm185_vm0, %v133_v11  ;;  %1267 = vmatpush3.bf16.msra.mxu1 %v1266_v14  ;;  %v476_v11 = vld [vmem:[#allocation5 + $0xf8] sm:$0xff]  ;;  %v459_v14 = vld [vmem:[#allocation5 + $0x70] sm:$0xff] }
  0x95   :  { %1133 = vmatprep.mubr.msk.f32.mxu0 %vm1537_vm1, %v1538_v31  ;;  %v1305_v13 = vpack.c.bf16 %v476_v11, %v475_v10  ;;  %v1307_v16 = vpack.c.bf16 %v460_v15, %v459_v14  ;;  %v1317_v10 = vpack.c.bf16 %v682_v9, %v681_v6  ;;  %v683_v11 = vld [vmem:[%s2003_s9 + $0x30] sm:$0xff] }
 0x102   :  { %v409_v23 = vpop.permute.xlu0 %408 }
 0x15f   :  { %v1114_v25 = vpop.f32.mrb[0].mxu0 }
 0x160   :  { %v270_v26 = vpop.f32.mrb[1].mxu0 }
 0x161   :  { %369 = vmatprep.mubr.f32.mxu1 %v270_v26 }
 0x162   :  { %370 = vmatmul.mubr.f32.vlgmr.msra.gmra.mrb[0].mxu1 %v1713_v1  ;;  %v1536_v1 = vmov 0.0|0.0  }
 0x163   :  { %374 = vmatprep.mubr.f32.mxu1 %v1114_v25  ;;  %v1117_v27 = vpop.f32.mrb[2].mxu0  ;;  %1268 = vmatprep.subr.bf16.mxu0 %v1536_v1 }
 0x164   :  { %v280_v28 = vpop.f32.mrb[3].mxu0 }
 0x166   :  { %375 = vmatmul.mubr.f32.gmra.mrb[2].mxu1 %v1718_v2  ;;  %v461_v2 = vld [vmem:[#allocation5 + $0x80] sm:$0xff] }
 0x167   :  { %379 = vmatprep.mubr.f32.mxu1 %v280_v28  ;;  %v1120_v29 = vpop.f32.mrb[4].mxu0  ;;  %v1277_v33 = vpack.c.bf16 %v462_v32, %v461_v2  ;;  %v414_v32 = vpop.permute.xlu0 %413 }
 0x168   :  { %v290_v30 = vpop.f32.mrb[5].mxu0 }
 0x169   :  { %1278 = vmatprep.subr.bf16.mxu1 %v1277_v33 }
 0x16a   :  { %380 = vmatmul.mubr.f32.gmra.mrb[4].mxu1 %v1723_v3  ;;  %v445_v3 = vld [vmem:[#allocation5] sm:$0xff] }
 0x16b   :  { %384 = vmatprep.mubr.f32.mxu1 %v1117_v27  ;;  %v1279_v36 = vpack.c.bf16 %v446_v34, %v445_v3  ;;  %v429_v54 = vpop.permute.xlu0 %428 }
 0x16d   :  { %1280 = vmatpush3.bf16.msra.mxu1 %v1279_v36 }
 0x16e   :  { %385 = vmatmul.mubr.f32.gmra.mrb[6].mxu1 %v1730_v5  ;;  %v463_v5 = vld [vmem:[#allocation5 + $0x90] sm:$0xff] }
 0x16f   :  { %389 = vmatprep.mubr.f32.mxu1 %v290_v30 }
 0x172   :  { %390 = vmatmul.mubr.f32.gmra.mrb[8].mxu1 %v1737_v7  ;;  %v1281_v7 = vpack.c.bf16 %v464_v35, %v463_v5  ;;  %v419_v35 = vpop.permute.xlu1 %418 }
 0x173   :  { %394 = vmatprep.mubr.f32.mxu1 %v1120_v29 }
 0x174   :  { %1282 = vmatprep.subr.bf16.mxu1 %v1281_v7 }
 0x175   :  { %1284 = vmatpush3.bf16.msra.mxu1 %v1283_v40 }
 0x176   :  { %395 = vmatmul.mubr.f32.gmra.mrb[10].mxu1 %v1742_v8  ;;  %v465_v8 = vld [vmem:[#allocation5 + $0xa0] sm:$0xff]  ;;  %v424_v43 = vpop.permute.xlu1 %423 }
 0x177   :  { %v1285_v41 = vpack.c.bf16 %v466_v39, %v465_v8 }
 0x179   :  { %1286 = vmatprep.subr.bf16.mxu1 %v1285_v41 }
 0x17a   :  { %1288 = vmatpush3.bf16.msra.mxu1 %v1287_v46  ;;  %v434_v55 = vpop.permute.xlu1 %433 }
 0x17b   :  { %1290 = vmatprep.subr.bf16.mxu1 %v1289_v47 }
 0x17e   :  { %1292 = vmatpush3.bf16.msra.mxu1 %v1291_v52 }
 0x17f   :  { %1294 = vmatprep.subr.bf16.mxu1 %v1293_v53 }
 0x182   :  { %1296 = vmatpush3.bf16.msra.mxu1 %v1295_v58 }
 0x183   :  { %1298 = vmatprep.subr.bf16.mxu1 %v1297_v59  ;;  %v442_v59 = vld [vmem:[#allocation3] sm:$0xff] }
 0x186   :  { %1300 = vmatpush3.bf16.msra.mxu1 %v1299_v0 }
 0x187   :  { %1302 = vmatprep.subr.bf16.mxu1 %v1301_v4  ;;  %v680_v4 = vld [vmem:[%s2003_s9 + $0x18] sm:$0xff] }
 0x18a   :  { %1304 = vmatpush3.bf16.msra.mxu1 %v1303_v12  ;;  %v684_v12 = vld [vmem:[%s2003_s9 + $0x38] sm:$0xff] }
 0x18b   :  { %1306 = vmatprep.subr.bf16.mxu1 %v1305_v13  ;;  %v1321_v13 = vpack.c.bf16 %v684_v12, %v683_v11  ;;  %v792_v11 = vld [vmem:[#allocation8 + $0x78] sm:$0xff] }
 0x18e   :  { %1308 = vmatpush3.bf16.msra.mxu1 %v1307_v16 }
 0x235   :  { %v984_v17 = vpop.f32.mrb[0].mxu1 }
 0x236   :  { %v985_v19 = vpop.f32.mrb[1].mxu1 }
 0x237   :  { %v986_v20 = vadd.f32 %v985_v19, %v984_v17 }
 0x239   :  { %v372_v21 = vadd.f32 %v986_v20, %v925_v18  ;;  %v987_v22 = vpop.f32.mrb[2].mxu1  ;;  %v685_v20 = vld [vmem:[%s2003_s9 + $0x40] sm:$0xff] }
 0x23a   :  { %v988_v24 = vpop.f32.mrb[3].mxu1 }
 0x23b   :  { %v989_v25 = vadd.f32 %v988_v24, %v987_v22  ;;  %v400_v26 = vmax.f32 %v372_v21, 0.0  ;;  %v686_v21 = vld [vmem:[%s2003_s9 + $0x48] sm:$0xff]  ;;  %v688_v24 = vld [vmem:[%s2003_s9 + $0x58] sm:$0xff] }
 0x23c   :  { %v1325_v22 = vpack.c.bf16 %v686_v21, %v685_v20  ;;  %v931_v20 = vld [vmem:[#allocation10] ss:$0 sm:$0xff] }
 0x23d   :  { %v377_v27 = vadd.f32 %v989_v25, %v925_v18  ;;  %v990_v28 = vpop.f32.mrb[4].mxu1  ;;  %v1923_v3 = vmul.f32 %v409_v23, %v400_v26  ;;  %v687_v23 = vld [vmem:[%s2003_s9 + $0x50] sm:$0xff]  ;;  %v689_v26 = vld [vmem:[%s2003_s9 + $0x60] sm:$0xff] }
 0x23e   :  { %v991_v29 = vpop.f32.mrb[5].mxu1  ;;  %v1329_v25 = vpack.c.bf16 %v688_v24, %v687_v23 }
 0x23f   :  { %v401_v30 = vmax.f32 %v377_v27, 0.0  ;;  %v992_v2 = vadd.f32 %v991_v29, %v990_v28  ;;  %v690_v27 = vld [vmem:[%s2003_s9 + $0x68] sm:$0xff]  ;;  %v691_v29 = vld [vmem:[%s2003_s9 + $0x70] sm:$0xff] }
 0x240   :  { %v1333_v28 = vpack.c.bf16 %v690_v27, %v689_v26 }
 0x241   :  { %v1925_v33 = vmul.f32 %v414_v32, %v401_v30  ;;  %v382_v34 = vadd.f32 %v992_v2, %v925_v18  ;;  %v993_v5 = vpop.f32.mrb[6].mxu1  ;;  %v692_v30 = vld [vmem:[%s2003_s9 + $0x78] sm:$0xff] }
 0x242   :  { %v994_v36 = vpop.f32.mrb[7].mxu1  ;;  %v1337_v2 = vpack.c.bf16 %v692_v30, %v691_v29  ;;  %v777_v32 = vld [vmem:[#allocation8] sm:$0xff] }
 0x243   :  { %v1269_v7 = vpack.c.bf16 %v1925_v33, %v1923_v3  ;;  %v995_v37 = vadd.f32 %v994_v36, %v993_v5  ;;  %v402_v38 = vmax.f32 %v382_v34, 0.0  ;;  %v780_v5 = vld [vmem:[#allocation8 + $0x18] sm:$0xff]  ;;  %v781_v36 = vld [vmem:[#allocation8 + $0x20] sm:$0xff] }
 0x244   :  { %v933_v30 = vld [vmem:[#allocation2] ss:$0 sm:$0xff] }
 0x245   :  { %v387_v8 = vadd.f32 %v995_v37, %v925_v18  ;;  %v996_v39 = vpop.f32.mrb[8].mxu1  ;;  %1270 = vmatpush3.bf16.msra.mxu0 %v1269_v7  ;;  %v438_v44 = vmul.f32 %v419_v35, %v402_v38  ;;  %v782_v7 = vld [vmem:[#allocation8 + $0x28] sm:$0xff]  ;;  %v783_v38 = vld [vmem:[#allocation8 + $0x30] sm:$0xff] }
 0x246   :  { %v997_v40 = vpop.f32.mrb[9].mxu1  ;;  %1271 = vmatprep.subr.bf16.mxu0 %v1536_v1  ;;  %v1349_v37 = vpack.c.bf16 %v782_v7, %v781_v36 }
 0x247   :  { %v403_v41 = vmax.f32 %v387_v8, 0.0  ;;  %v998_v42 = vadd.f32 %v997_v40, %v996_v39  ;;  %v784_v8 = vld [vmem:[#allocation8 + $0x38] sm:$0xff]  ;;  %v785_v40 = vld [vmem:[#allocation8 + $0x40] sm:$0xff] }
 0x248   :  { %v1353_v39 = vpack.c.bf16 %v784_v8, %v783_v38 }
 0x249   :  { %v439_v45 = vmul.f32 %v424_v43, %v403_v41  ;;  %v392_v46 = vadd.f32 %v998_v42, %v925_v18  ;;  %v999_v47 = vpop.f32.mrb[10].mxu1  ;;  %v786_v41 = vld [vmem:[#allocation8 + $0x48] sm:$0xff]  ;;  %v787_v43 = vld [vmem:[#allocation8 + $0x50] sm:$0xff] }
 0x24a   :  { %v1000_v48 = vpop.f32.mrb[11].mxu1  ;;  %v1357_v42 = vpack.c.bf16 %v786_v41, %v785_v40 }
 0x24b   :  { %v1272_v49 = vpack.c.bf16 %v439_v45, %v438_v44  ;;  %v1001_v50 = vadd.f32 %v1000_v48, %v999_v47  ;;  %v404_v51 = vmax.f32 %v392_v46, 0.0  ;;  %v789_v46 = vld [vmem:[#allocation8 + $0x60] sm:$0xff]  ;;  %v790_v47 = vld [vmem:[#allocation8 + $0x68] sm:$0xff] }
 0x24c   :  { %v1365_v48 = vpack.c.bf16 %v790_v47, %v789_v46 }
 0x24d   :  { %v397_v52 = vadd.f32 %v1001_v50, %v925_v18  ;;  %1273 = vmatpush3.bf16.msra.mxu0 %v1272_v49  ;;  %v440_v56 = vmul.f32 %v429_v54, %v404_v51 }
 0x24e   :  { %1274 = vmatprep.subr.bf16.mxu0 %v1536_v1  ;;  %v677_v1 = vld [vmem:[%s2003_s9] sm:$0xff] }
 0x24f   :  { %v405_v53 = vmax.f32 %v397_v52, 0.0  ;;  %v1309_v0 = vpack.c.bf16 %v678_v62, %v677_v1  ;;  %v929_v52 = vld [vmem:[%s2002_s8] ss:$0 sm:$0xff] }
 0x251   :  { %v441_v57 = vmul.f32 %v434_v55, %v405_v53 }
 0x253   :  { %v1275_v58 = vpack.c.bf16 %v441_v57, %v440_v56  ;;  %v660_v57 = vpop.permute.xlu0 %659 }
 0x255   :  { %1276 = vmatpush3.bf16.msra.mxu0 %v1275_v58 }
 0x256   :  { %1310 = vmatprep.subr.bf16.mxu0 %v1309_v0 }
 0x258   :  { %1134 = vmatmul.mubr.msk.f32.vlgmr.msra.gmra.mrb[6].mxu0 %vm481_vm2, %v442_v59 }
 0x259   :  { %1136 = vmatprep.mubr.msk.f32.mxu0 %vm1537_vm1, %v1538_v31  ;;  %1312 = vmatpush3.bf16.msra.mxu0 %v1309_v0 }
 0x25c   :  { %1137 = vmatmul.mubr.msk.f32.gmra.mrb[8].mxu0 %vm481_vm2, %v443_v60  ;;  %v665_v60 = vpop.permute.xlu1 %664 }
 0x25d   :  { %1139 = vmatprep.mubr.msk.f32.mxu0 %vm1537_vm1, %v1538_v31  ;;  %v1313_v31 = vpack.c.bf16 %v680_v4, %v679_v63 }
 0x25f   :  { %1314 = vmatprep.subr.bf16.mxu0 %v1313_v31 }
 0x260   :  { %1140 = vmatmul.mubr.msk.f32.gmra.mrb[10].mxu0 %vm481_vm2, %v444_v61 }
 0x261   :  { %1316 = vmatpush3.bf16.msra.mxu0 %v1313_v31  ;;  %v670_v31 = vpop.permute.xlu0 %669 }
 0x262   :  { %1318 = vmatprep.subr.bf16.mxu0 %v1317_v10 }
 0x265   :  { %1320 = vmatpush3.bf16.msra.mxu0 %v1317_v10  ;;  %v791_v10 = vld [vmem:[#allocation8 + $0x70] sm:$0xff] }
 0x266   :  { %1322 = vmatprep.subr.bf16.mxu0 %v1321_v13  ;;  %v1369_v12 = vpack.c.bf16 %v792_v11, %v791_v10 }
 0x269   :  { %1324 = vmatpush3.bf16.msra.mxu0 %v1321_v13  ;;  %v930_v13 = vld [vmem:[#allocation7] ss:$0 sm:$0xff] }
 0x26a   :  { %1326 = vmatprep.subr.bf16.mxu0 %v1325_v22 }
 0x26d   :  { %1328 = vmatpush3.bf16.msra.mxu0 %v1325_v22 }
 0x26e   :  { %1330 = vmatprep.subr.bf16.mxu0 %v1329_v25 }
 0x271   :  { %1332 = vmatpush3.bf16.msra.mxu0 %v1329_v25  ;;  %v932_v25 = vld [vmem:[#allocation11] ss:$0 sm:$0xff] }
 0x272   :  { %1334 = vmatprep.subr.bf16.mxu0 %v1333_v28 }
 0x275   :  { %1336 = vmatpush3.bf16.msra.mxu0 %v1333_v28 }
 0x276   :  { %1338 = vmatprep.subr.bf16.mxu0 %v1337_v2 }
 0x279   :  { %1340 = vmatpush3.bf16.msra.mxu0 %v1337_v2 }
 0x32b   :  { %v557_v14 = vpop.f32.mrb[6].mxu0 }
 0x32c   :  { %v1135_v15 = vpop.f32.mrb[7].mxu0  ;;  %641 = vmatprep.mubr.f32.mxu1 %v557_v14 }
 0x32d   :  { %642 = vmatmul.mubr.f32.vlgmr.msra.gmra.mrb[12].mxu1 %v1923_v3  ;;  %v778_v3 = vld [vmem:[#allocation8 + $0x8] sm:$0xff] }
 0x32e   :  { %v1341_v34 = vpack.c.bf16 %v778_v3, %v777_v32 }
 0x32f   :  { %v562_v16 = vpop.f32.mrb[8].mxu0 }
 0x330   :  { %v1138_v17 = vpop.f32.mrb[9].mxu0  ;;  %646 = vmatprep.mubr.f32.mxu1 %v562_v16  ;;  %1342 = vmatprep.subr.bf16.mxu1 %v1341_v34 }
 0x331   :  { %647 = vmatmul.mubr.f32.gmra.mrb[14].mxu1 %v1925_v33  ;;  %v779_v33 = vld [vmem:[#allocation8 + $0x10] sm:$0xff] }
 0x332   :  { %v1345_v35 = vpack.c.bf16 %v780_v5, %v779_v33  ;;  %1344 = vmatpush3.bf16.msra.mxu1 %v1341_v34 }
 0x333   :  { %v567_v18 = vpop.f32.mrb[10].mxu0 }
 0x334   :  { %v1141_v19 = vpop.f32.mrb[11].mxu0  ;;  %651 = vmatprep.mubr.f32.mxu1 %v567_v18  ;;  %1346 = vmatprep.subr.bf16.mxu1 %v1345_v35 }
 0x335   :  { %652 = vmatmul.mubr.f32.gmra.mrb[16].mxu1 %v438_v44  ;;  %v788_v44 = vld [vmem:[#allocation8 + $0x58] sm:$0xff] }
 0x336   :  { %1348 = vmatpush3.bf16.msra.mxu1 %v1345_v35  ;;  %v1361_v45 = vpack.c.bf16 %v788_v44, %v787_v43 }
 0x337   :  { %1350 = vmatprep.subr.bf16.mxu1 %v1349_v37 }
 0x33a   :  { %1352 = vmatpush3.bf16.msra.mxu1 %v1349_v37 }
 0x33b   :  { %1354 = vmatprep.subr.bf16.mxu1 %v1353_v39 }
 0x33e   :  { %1356 = vmatpush3.bf16.msra.mxu1 %v1353_v39 }
 0x33f   :  { %1358 = vmatprep.subr.bf16.mxu1 %v1357_v42 }
 0x342   :  { %1360 = vmatpush3.bf16.msra.mxu1 %v1357_v42 }
 0x343   :  { %1362 = vmatprep.subr.bf16.mxu1 %v1361_v45 }
 0x346   :  { %1364 = vmatpush3.bf16.msra.mxu1 %v1361_v45 }
 0x347   :  { %1366 = vmatprep.subr.bf16.mxu1 %v1365_v48 }
 0x34a   :  { %1368 = vmatpush3.bf16.msra.mxu1 %v1365_v48 }
 0x34b   :  { %1370 = vmatprep.subr.bf16.mxu1 %v1369_v12 }
 0x34e   :  { %1372 = vmatpush3.bf16.msra.mxu1 %v1369_v12 }
 0x400   :  { %v1043_v49 = vpop.f32.mrb[12].mxu1 }
 0x401   :  { %v1044_v50 = vpop.f32.mrb[13].mxu1 }
 0x402   :  { %v1045_v51 = vadd.f32 %v1044_v50, %v1043_v49 }
 0x404   :  { %v1046_v53 = vpop.f32.mrb[14].mxu1  ;;  %v644_v55 = vadd.f32 %v1045_v51, %v929_v52 }
 0x405   :  { %v1047_v54 = vpop.f32.mrb[15].mxu1 }
 0x406   :  { %v1048_v56 = vadd.f32 %v1047_v54, %v1046_v53  ;;  %v672_v1 = vmul.f32 %v660_v57, %v644_v55 }
 0x408   :  { %v649_v58 = vadd.f32 %v1048_v56, %v929_v52  ;;  %v1049_v59 = vpop.f32.mrb[16].mxu1 }
 0x409   :  { %v1050_v61 = vpop.f32.mrb[17].mxu1 }
 0x40a   :  { %v673_v62 = vmul.f32 %v665_v60, %v649_v58  ;;  %v1051_v63 = vadd.f32 %v1050_v61, %v1049_v59 }
 0x40c   :  { %v654_v0 = vadd.f32 %v1051_v63, %v929_v52  ;;  %v675_v4 = vmul.f32 %v673_v62, %v672_v1 }
 0x40e   :  { %v674_v6 = vmul.f32 %v670_v31, %v654_v0  ;;  %1174 = vmatprep.mubr.f32.mxu0 %v675_v4 }
 0x410   :  { %v676_v9 = vmul.f32 %v674_v6, %v672_v1 }
 0x412   :  { %1175 = vmatmul.mubr.f32.vlgmr.msra.gmra.mrb[12].mxu0 %v676_v9 }
 0x4e5   :  { %v1176_v14 = vpop.f32.mrb[12].mxu0 }
 0x4e6   :  { %v772_v15 = vadd.f32 %v1176_v14, %v930_v13  ;;  %v766_v16 = vpop.f32.mrb[13].mxu0 }
 0x4e7   :  { %v767_v17 = vadd.f32 %v930_v13, %v766_v16 }
 0x4e8   :  { %v776_v19 = vmax.f32 %v772_v15, 0.0 }
 0x4e9   :  { %v775_v18 = vmax.f32 %v767_v17, 0.0 }
 0x4eb   :  { %1209 = vmatprep.mubr.f32.mxu1 %v775_v18 }
 0x4ec   :  { %1210 = vmatmul.mubr.f32.vlgmr.msra.gmra.mrb[18].mxu1 %v776_v19 }
 0x5bf   :  { %v1211_v21 = vpop.f32.mrb[18].mxu1 }
 0x5c0   :  { %v872_v22 = vadd.f32 %v1211_v21, %v931_v20  ;;  %v866_v23 = vpop.f32.mrb[19].mxu1 }
 0x5c1   :  { %v867_v24 = vadd.f32 %v931_v20, %v866_v23 }
 0x5c2   :  { %v876_v26 = vmax.f32 %v872_v22, 0.0 }
 0x5c3   :  { %v875_v27 = vmax.f32 %v867_v24, 0.0 }
 0x5c4   :  { %v885_v28 = vmul.f32 %v932_v25, %v876_v26 }
 0x5c5   :  { %v884_v29 = vmul.f32 %v932_v25, %v875_v27 }
 0x5c6   :  { %888 = vadd.xlane.f32.xlu0 %v885_v28 }
 0x5c7   :  { %886 = vadd.xlane.f32.xlu1 %v884_v29 }
 0x653   :  { %v889_v2 = vpop.xlane.xlu0 %888 }
 0x654   :  { %v898_v32 = vadd.f32 %v933_v30, %v889_v2  ;;  %v887_v3 = vpop.xlane.xlu1 %886 }
 0x655   :  { %v897_v33 = vadd.f32 %v933_v30, %v887_v3 }
 0x656   :  { %906 = vperm.xlu1 %1386, %v898_v32  }
 0x657   :  { %901 = vperm.xlu0 %1385, %v897_v33  }
 0x6d5   :  { %v907_v34 = vpop.permute.xlu1 %906 }
 0x6d6   :  { %910 = vst [vmem:[%s2009_s15 + $0x8] sm:$0xff] %v907_v34  ;;  %v902_v5 = vpop.permute.xlu0 %901 }
 0x6d7   :  { %909 = vst [vmem:[%s2009_s15] sm:$0xff] %v902_v5 }
 0x6d8   :  { %915 = vsyncpa [#allocation4], 1 }
 0x6d9   :  { %916 = vsyncpa [#allocation6], 1 }
 0x6da   :  { %917 = vsyncpa [#allocation9], 1 }
 0x6db   :  { %918 = vsyncpa [#allocation12], 1 }

</bundles_post_ra>
